<compile_context>
chip_gen: v7x
topology: tpu7x:2x2x1
jax: 0.10.0
libtpu: 0.0.40
codegen_flags: <defaults>
</compile_context>

<pallas_src>
import functools

import jax
import jax.numpy as jnp
from jax import lax
from jax.experimental import pallas as pl
from jax.experimental.pallas import tpu as pltpu

KSIZE = 5
PAD = 2
HALO = 8          # sublane-aligned halo (>= 2*PAD); keeps the window load aligned


def _round_up(x, m):
    return ((x + m - 1) // m) * m


def _sliceconv_kernel(x_ref, w_ref, b_ref, o_ref, *, tl, window, align):
    # x_ref: (L_padded, C_in)          padded input row of this batch (VMEM-resident)
    # w_ref: (KSIZE, C_in, C_out_pad)  tap-major weights (lane-padded, tiny)
    # b_ref: (1, C_out)                f32 bias
    # o_ref: (tl, C_out)               f32 output tile (unpadded C_out)
    c_out = o_ref.shape[1]
    j = pl.program_id(1)
    base = pl.multiple_of(j * tl, align)
    # One aligned dynamic window load; the per-tap shifts are *static* slices of the
    # loaded value (cheap sublane relayouts) -- no unaligned dynamic packed-dtype loads.
    xw = x_ref[pl.ds(base, window), :]                           # (tl + HALO, C_in)
    acc = jnp.dot(xw[0:tl, :], w_ref[0],
                  preferred_element_type=jnp.float32)            # (tl, C_out_pad) f32
    for k in range(1, KSIZE):
        acc = acc + jnp.dot(xw[k:k + tl, :], w_ref[k],
                            preferred_element_type=jnp.float32)
    o_ref[...] = (acc[:, :c_out] + b_ref[...]).astype(o_ref.dtype)


def sliceconv_forward(x_ncl, weight, bias, *, block_l=1024, use_bf16=True):
    """x_ncl: (N, C_in, L) like PyTorch. weight: (C_out, C_in, KSIZE). bias: (C_out,).
    Returns (N, L, C_out) float32, matching `self.conv(x).permute(0, 2, 1)`."""
    n, c_in, seq_len = x_ncl.shape
    c_out, c_in_w, ksz = weight.shape
    assert ksz == KSIZE and c_in_w == c_in

    compute_dtype = jnp.bfloat16 if use_bf16 else jnp.float32
    sub = 16 if use_bf16 else 8           # sublane packing granule of the compute dtype

    # Length tile: ~block_l rows, rounded to the packing granule; make sure the grid
    # has >= 2 total steps when possible so both v7x TensorCores get work.
    num_blocks = max(1, pl.cdiv(seq_len, block_l))
    if n * num_blocks < 2 and seq_len > sub:
        num_blocks = 2
    tl = _round_up(pl.cdiv(seq_len, num_blocks), sub)
    l_up = _round_up(seq_len, tl)
    num_l = l_up // tl
    window = tl + HALO                    # covers the 2*PAD taps with aligned slack
    lp_total = l_up + HALO                # front PAD + data + trailing zeros
    pad_back = lp_total - PAD - seq_len   # >= PAD; extra zeros are never consumed

    # Single-pass XLA prep (no 5x im2col slab): channels-last, pad length, cast.
    x_nlc = jnp.transpose(x_ncl, (0, 2, 1)).astype(compute_dtype)        # (N, L, C_in)
    x_pad = jnp.pad(x_nlc, ((0, 0), (PAD, pad_back), (0, 0)))            # (N, lp_total, C_in)

    # Tap-major weights (K, C_in, C_out), lane-padded only on the (tiny) weight side;
    # the contraction dim K*C_in is deliberately NOT padded (kernel is mem-bound).
    c_out_p = _round_up(c_out, 128)
    w = jnp.transpose(weight, (2, 1, 0)).astype(compute_dtype)           # (K, C_in, C_out)
    w_p = jnp.pad(w, ((0, 0), (0, 0), (0, c_out_p - c_out)))             # (K, C_in, C_out_p)
    b = bias.astype(jnp.float32).reshape(1, c_out)

    kernel = functools.partial(_sliceconv_kernel, tl=tl, window=window, align=sub)

    # Batch axis carries megacore parallelism; the length axis is 'arbitrary' so the
    # resident input block is fetched once per batch (flip when there is one batch).
    dim_sem = ("parallel", "arbitrary") if n > 1 else ("arbitrary", "parallel")

    out = pl.pallas_call(
        kernel,
        out_shape=jax.ShapeDtypeStruct((n, l_up, c_out), jnp.float32),
        grid=(n, num_l),
        in_specs=[
            # Whole padded batch row; index_map ignores the length axis -> resident.
            pl.BlockSpec((None, lp_total, c_in), lambda bi, li: (bi, 0, 0)),
            pl.BlockSpec((KSIZE, c_in, c_out_p), lambda bi, li: (0, 0, 0)),
            pl.BlockSpec((1, c_out), lambda bi, li: (0, 0)),
        ],
        # Direct, unpadded output: last block dim == full C_out, so only useful bytes
        # are written to HBM and no post-kernel slice pass is needed.
        out_specs=pl.BlockSpec((None, tl, c_out), lambda bi, li: (bi, li, 0)),
        compiler_params=pltpu.CompilerParams(
            dimension_semantics=dim_sem,
            vmem_limit_bytes=32 * 1024 * 1024,   # explicit budget (v7x headroom)
        ),
    )(x_pad, w_p, b)

    return out[:, :seq_len, :] if l_up != seq_len else out


def _reference(x_ncl, weight, bias):
    # Pure-JAX reference (cross-correlation, same as PyTorch Conv1d), then permute.
    y = lax.conv_general_dilated(
        x_ncl, weight,
        window_strides=(1,), padding=((PAD, PAD),),
        dimension_numbers=("NCH", "OIH", "NCH"))
    y = y + bias[None, :, None]
    return jnp.transpose(y, (0, 2, 1))


if __name__ == "__main__":
    # Small shapes consistent with the module: inputsize=32, outputsize=5.
    batch, inputsize, outputsize, seq_len = 2, 32, 5, 16

    key = jax.random.PRNGKey(0)
    kx, kw, kb = jax.random.split(key, 3)
    x = jax.random.normal(kx, (batch, inputsize, seq_len), dtype=jnp.float32)
    # Deterministic synthetic params (Conv1d weight: (C_out, C_in, KSIZE), bias: (C_out,)).
    fan_in = inputsize * KSIZE
    bound = 1.0 / (fan_in ** 0.5)
    weight = jax.random.uniform(kw, (outputsize, inputsize, KSIZE),
                                minval=-bound, maxval=bound, dtype=jnp.float32)
    bias = jax.random.uniform(kb, (outputsize,),
                              minval=-bound, maxval=bound, dtype=jnp.float32)

    out = jax.jit(sliceconv_forward)(x, weight, bias)
    jax.block_until_ready(out)

    # Compare against the f32 reference computed on the same bf16-rounded operands the
    # kernel consumes (both accumulate in f32, so the comparison stays tight).
    ref = _reference(x.astype(jnp.bfloat16).astype(jnp.float32),
                     weight.astype(jnp.bfloat16).astype(jnp.float32), bias)
    assert out.shape == (batch, seq_len, outputsize), out.shape
    max_err = float(jnp.max(jnp.abs(out - ref)))
    assert max_err < 1e-2, max_err
    print("KERNEL_OK")
</pallas_src>

<mosaic_0001>
module attributes {stable_mosaic.version = 11 : i64} {
  func.func @_sliceconv_kernel(%arg0: i32, %arg1: i32, %arg2: memref<1x24x32xbf16, #tpu.memory_space<vmem>>, %arg3: memref<5x32x128xbf16, #tpu.memory_space<vmem>>, %arg4: memref<1x5xf32, #tpu.memory_space<vmem>>, %arg5: memref<1x16x5xf32, #tpu.memory_space<vmem>>) attributes {dimension_semantics = [#tpu.dimension_semantics<parallel>, #tpu.dimension_semantics<arbitrary>], iteration_bounds = array<i64: 2, 1>, scalar_prefetch = 0 : i64, scratch_operands = 0 : i64, tpu.core_type = #tpu.core_type<tc>, window_params = [{transform_indices = @transform_0, window_bounds = array<i64: 1, 24, 32>}, {pipeline_mode = #tpu.pipeline_mode<synchronous>, transform_indices = @transform_1, window_bounds = array<i64: 5, 32, 128>}, {pipeline_mode = #tpu.pipeline_mode<synchronous>, transform_indices = @transform_2, window_bounds = array<i64: 1, 5>}, {transform_indices = @transform_3, window_bounds = array<i64: 1, 16, 5>}]} {
    %c16_i32 = arith.constant 16 : i32
    %0 = arith.muli %arg1, %c16_i32 : i32
    %1 = tpu.assume_multiple %0, 16 : i32
    %c0 = arith.constant 0 : index
    %2 = arith.index_cast %1 : i32 to index
    %c0_0 = arith.constant 0 : index
    %3 = vector.load %arg2[%c0, %2, %c0_0] : memref<1x24x32xbf16, #tpu.memory_space<vmem>>, vector<1x24x32xbf16>
    %4 = vector.shape_cast %3 : vector<1x24x32xbf16> to vector<24x32xbf16>
    %5 = vector.extract_strided_slice %4 {offsets = [0, 0], sizes = [16, 32], strides = [1, 1]} : vector<24x32xbf16> to vector<16x32xbf16>
    %c0_1 = arith.constant 0 : index
    %c0_2 = arith.constant 0 : index
    %c0_3 = arith.constant 0 : index
    %6 = vector.load %arg3[%c0_1, %c0_2, %c0_3] : memref<5x32x128xbf16, #tpu.memory_space<vmem>>, vector<1x32x128xbf16>
    %7 = vector.shape_cast %6 : vector<1x32x128xbf16> to vector<32x128xbf16>
    %cst = arith.constant dense<0.000000e+00> : vector<16x128xf32>
    %8 = tpu.matmul %5, %7, %cst {dimension_numbers = #tpu.dot_dimension_numbers<[1], [0], [0], [1], [0, 0, 1, 1], [], []>} : vector<16x32xbf16>, vector<32x128xbf16>, vector<16x128xf32> -> vector<16x128xf32>
    %9 = vector.extract_strided_slice %4 {offsets = [1, 0], sizes = [16, 32], strides = [1, 1]} : vector<24x32xbf16> to vector<16x32xbf16>
    %c1 = arith.constant 1 : index
    %c0_4 = arith.constant 0 : index
    %c0_5 = arith.constant 0 : index
    %10 = vector.load %arg3[%c1, %c0_4, %c0_5] : memref<5x32x128xbf16, #tpu.memory_space<vmem>>, vector<1x32x128xbf16>
    %11 = vector.shape_cast %10 : vector<1x32x128xbf16> to vector<32x128xbf16>
    %cst_6 = arith.constant dense<0.000000e+00> : vector<16x128xf32>
    %12 = tpu.matmul %9, %11, %cst_6 {dimension_numbers = #tpu.dot_dimension_numbers<[1], [0], [0], [1], [0, 0, 1, 1], [], []>} : vector<16x32xbf16>, vector<32x128xbf16>, vector<16x128xf32> -> vector<16x128xf32>
    %13 = arith.addf %8, %12 : vector<16x128xf32>
    %14 = vector.extract_strided_slice %4 {offsets = [2, 0], sizes = [16, 32], strides = [1, 1]} : vector<24x32xbf16> to vector<16x32xbf16>
    %c2 = arith.constant 2 : index
    %c0_7 = arith.constant 0 : index
    %c0_8 = arith.constant 0 : index
    %15 = vector.load %arg3[%c2, %c0_7, %c0_8] : memref<5x32x128xbf16, #tpu.memory_space<vmem>>, vector<1x32x128xbf16>
    %16 = vector.shape_cast %15 : vector<1x32x128xbf16> to vector<32x128xbf16>
    %cst_9 = arith.constant dense<0.000000e+00> : vector<16x128xf32>
    %17 = tpu.matmul %14, %16, %cst_9 {dimension_numbers = #tpu.dot_dimension_numbers<[1], [0], [0], [1], [0, 0, 1, 1], [], []>} : vector<16x32xbf16>, vector<32x128xbf16>, vector<16x128xf32> -> vector<16x128xf32>
    %18 = arith.addf %13, %17 : vector<16x128xf32>
    %19 = vector.extract_strided_slice %4 {offsets = [3, 0], sizes = [16, 32], strides = [1, 1]} : vector<24x32xbf16> to vector<16x32xbf16>
    %c3 = arith.constant 3 : index
    %c0_10 = arith.constant 0 : index
    %c0_11 = arith.constant 0 : index
    %20 = vector.load %arg3[%c3, %c0_10, %c0_11] : memref<5x32x128xbf16, #tpu.memory_space<vmem>>, vector<1x32x128xbf16>
    %21 = vector.shape_cast %20 : vector<1x32x128xbf16> to vector<32x128xbf16>
    %cst_12 = arith.constant dense<0.000000e+00> : vector<16x128xf32>
    %22 = tpu.matmul %19, %21, %cst_12 {dimension_numbers = #tpu.dot_dimension_numbers<[1], [0], [0], [1], [0, 0, 1, 1], [], []>} : vector<16x32xbf16>, vector<32x128xbf16>, vector<16x128xf32> -> vector<16x128xf32>
    %23 = arith.addf %18, %22 : vector<16x128xf32>
    %24 = vector.extract_strided_slice %4 {offsets = [4, 0], sizes = [16, 32], strides = [1, 1]} : vector<24x32xbf16> to vector<16x32xbf16>
    %c4 = arith.constant 4 : index
    %c0_13 = arith.constant 0 : index
    %c0_14 = arith.constant 0 : index
    %25 = vector.load %arg3[%c4, %c0_13, %c0_14] : memref<5x32x128xbf16, #tpu.memory_space<vmem>>, vector<1x32x128xbf16>
    %26 = vector.shape_cast %25 : vector<1x32x128xbf16> to vector<32x128xbf16>
    %cst_15 = arith.constant dense<0.000000e+00> : vector<16x128xf32>
    %27 = tpu.matmul %24, %26, %cst_15 {dimension_numbers = #tpu.dot_dimension_numbers<[1], [0], [0], [1], [0, 0, 1, 1], [], []>} : vector<16x32xbf16>, vector<32x128xbf16>, vector<16x128xf32> -> vector<16x128xf32>
    %28 = arith.addf %23, %27 : vector<16x128xf32>
    %29 = vector.extract_strided_slice %28 {offsets = [0, 0], sizes = [16, 5], strides = [1, 1]} : vector<16x128xf32> to vector<16x5xf32>
    %c0_16 = arith.constant 0 : index
    %c0_17 = arith.constant 0 : index
    %30 = vector.load %arg4[%c0_16, %c0_17] : memref<1x5xf32, #tpu.memory_space<vmem>>, vector<1x5xf32>
    %31 = vector.broadcast %30 : vector<1x5xf32> to vector<16x5xf32>
    %32 = arith.addf %29, %31 : vector<16x5xf32>
    %c0_18 = arith.constant 0 : index
    %c0_19 = arith.constant 0 : index
    %c0_20 = arith.constant 0 : index
    %33 = vector.load %arg5[%c0_18, %c0_19, %c0_20] : memref<1x16x5xf32, #tpu.memory_space<vmem>>, vector<1x16x5xf32>
    %34 = vector.shape_cast %33 : vector<1x16x5xf32> to vector<16x5xf32>
    %35 = vector.shape_cast %32 : vector<16x5xf32> to vector<1x16x5xf32>
    tpu.vector_store %arg5[%c0_18, %c0_19, %c0_20], %35 {strides = array<i32>} : memref<1x16x5xf32, #tpu.memory_space<vmem>>, vector<1x16x5xf32>,
    return
  }
  func.func @transform_0(%arg0: i32, %arg1: i32) -> (i32, i32, i32) {
    %c0_i32 = arith.constant 0 : i32
    %c0_i32_0 = arith.constant 0 : i32
    %c0_i32_1 = arith.constant 0 : i32
    return %arg0, %c0_i32, %c0_i32_0 : i32, i32, i32
  }
  func.func @transform_1(%arg0: i32, %arg1: i32) -> (i32, i32, i32) {
    %c0_i32 = arith.constant 0 : i32
    %c0_i32_0 = arith.constant 0 : i32
    %c0_i32_1 = arith.constant 0 : i32
    %c0_i32_2 = arith.constant 0 : i32
    return %c0_i32, %c0_i32_0, %c0_i32_1 : i32, i32, i32
  }
  func.func @transform_2(%arg0: i32, %arg1: i32) -> (i32, i32) {
    %c0_i32 = arith.constant 0 : i32
    %c0_i32_0 = arith.constant 0 : i32
    %c0_i32_1 = arith.constant 0 : i32
    return %c0_i32, %c0_i32_0 : i32, i32
  }
  func.func @transform_3(%arg0: i32, %arg1: i32) -> (i32, i32, i32) {
    %c0_i32 = arith.constant 0 : i32
    %c0_i32_0 = arith.constant 0 : i32
    return %arg0, %arg1, %c0_i32 : i32, i32, i32
  }
}

</mosaic_0001>

<bundles_post_ra>
// kernel: sliceconv_forward.1
= control target key start
LH: loop header
LB: loop body
LE: loop exit
PB: predicated region body
PF: predicated region fallthrough
CT: control target
= control target key end

     0   :  { %s832_s12 = smov 0   ;;  %s834_s13 = smov 0   ;;  %s927_s0 = inlined_call_operand.vmem [shape: bf16[2,24,32], index: 0, kind: input, shape index: {}]   ;;  %s928_s1 = inlined_call_operand.vmem [shape: bf16[5,32,128], index: 1, kind: input, shape index: {}]   ;;  %s929_s2 = inlined_call_operand.vmem [shape: f32[1,5], index: 2, kind: input, shape index: {}]   ;;  %s930_s3 = inlined_call_operand.vmem [shape: f32[2,16,5], index: 3, kind: output, shape index: {}]  }
   0x1   :  { %s836_s14 = smov 0  }
   0x2 LB: > { %s25_s15 = sadd.s32 1, %s804_s13  ;;  %p651_p0 = scmp.ge.s32.totalorder %s808_s14, 1  ;;  %s808_s14 = sphi %s836_s14, %s13_s14   ;;  %s804_s13 = sphi %s834_s13, %s932_s13   ;;  %s800_s12 = sphi %s832_s12, %s931_s12  }
   0x3   : > { %p27_p1 = scmp.ge.s32.totalorder %s25_s15, 2  ;;  %p151_p2 = scmp.lt.s32.totalorder %s808_s14, 3 }
   0x5   : > { %s934_s15 = smov (%p27_p1, %s25_s15), 0  ;;  %p152_p3 = pnand %p651_p0, %p151_p2 }
   0x6   : > { %v774_v0 = vld [vmem:[%s928_s1 + $0x10] sm:$0xff] (!%p152_p3)   ;;  %v810_v1 = vmov (!%p152_p3), 0.0   ;;  %v775_v2 = vld [vmem:[%s928_s1] sm:$0xff] (!%p152_p3)   ;;  %v776_v3 = vld [vmem:[%s928_s1 + $0x18] sm:$0xff] (!%p152_p3)   ;;  %vm811_vm0 = vmmov (!%p152_p3), 0   ;;  %p179_p4 = scmp.lt.s32.totalorder (!%p152_p3), %s800_s12, 1 }
   0x7   : > { %155 = sbr.rel (%p152_p3) target bundleno = 261 (0x105), region = 32  ;;  %707 = vmatprep.subr.bf16.mxu0 (!%p152_p3), %v810_v1  ;;  %715 = vmatprep.subr.bf16.mxu1 (!%p152_p3), %v810_v1  ;;  %v777_v4 = vld [vmem:[%s928_s1 + $0x8] sm:$0xff] (!%p152_p3)   ;;  %vm245_vm1 = vcmask (!%p152_p3), 261120   ;;  %v781_v5 = vld [vmem:[%s928_s1 + $0x30] sm:$0xff] (!%p152_p3)   ;;  %v783_v11 = vld [vmem:[%s928_s1 + $0x38] sm:$0xff] (!%p152_p3)   ;;  %vm350_vm4 = vcmask (!%p152_p3), 1046528  }
   0x8   : > { %708 = vmatpush3.bf16.msra.mxu0 (!%p152_p3), %v774_v0  ;;  %711 = vmatprep.mubr.msk.bf16.mxu0 (!%p152_p3), %vm811_vm0, %v810_v1  ;;  %vm220_vm2 = vsmask.f32 (!%p152_p3), 7424  ;;  %v780_v20 = vld [vmem:[%s928_s1 + $0x20] sm:$0xff] (!%p152_p3)   ;;  %vm417_vm3 = vsmask.f32 (!%p152_p3), 6400  ;;  %v782_v25 = vld [vmem:[%s928_s1 + $0x28] sm:$0xff] (!%p152_p3)  }
   0x9   : > { %716 = vmatpush3.bf16.msra.mxu1 (!%p152_p3), %v775_v2  ;;  %709 = vmatprep.subr.bf16.mxu0 (!%p152_p3), %v810_v1  ;;  %v784_v29 = vld [vmem:[%s928_s1 + $0x40] sm:$0xff] (!%p152_p3)   ;;  %v785_v30 = vld [vmem:[%s928_s1 + $0x48] sm:$0xff] (!%p152_p3)   ;;  %vm490_vm5 = vcmask (!%p152_p3), 1045504   ;;  %vm561_vm6 = vcmask (!%p152_p3), 39936  }
   0xa   : > { %717 = vmatprep.subr.bf16.mxu1 (!%p152_p3), %v810_v1  ;;  %719 = vmatprep.mubr.msk.bf16.mxu1 (!%p152_p3), %vm811_vm0, %v810_v1  ;;  %v688_v57 = vld [vmem:[%s929_s2] ss:$0 sm:$0xff] (!%p152_p3) }
   0xc   : > { %710 = vmatpush3.bf16.msra.mxu0 (!%p152_p3), %v776_v3 }
   0xd   : > { %718 = vmatpush3.bf16.msra.mxu1 (!%p152_p3), %v777_v4  ;;  %723 = vmatprep.subr.bf16.mxu0 (!%p152_p3), %v810_v1 }
   0xe   : > { %s936_s12 = smov (!%p179_p4, %s800_s12), 1  ;;  %731 = vmatprep.subr.bf16.mxu1 %v810_v1 }
   0xf   : > { %s747_s24 = smul.u32 12, %s936_s12  ;;  %s691_s17 = sshll.u32 %s936_s12, 4 }
  0x10   : > { %s192_s22 = scalar_lea.vmem %s930_s3, %s691_s17 }
  0x11   : > { %s183_s27 = scalar_lea.vmem %s927_s0, %s747_s24 }
  0x12   : > { %v778_v6 = vld [vmem:[%s183_s27] sm:$0xff]   ;;  %v779_v7 = vld [vmem:[%s183_s27 + $0x8] ss:$0 sps:$4 sm:$0xff]  }
  0x13   : > { %v222_v8 = vshrl.u32 %v778_v6, 16  ;;  %v224_v9 = vshll.u32 %v778_v6, 16  ;;  %v229_v10 = vshll.u32 %v779_v7, 16  ;;  %720 = vmatmul.mubr.msk.bf16.vlgmr.msra.gmra.mrb[0].mxu1 %vm245_vm1, %v778_v6  ;;  %v421_v12 = vshrl.u32 %v779_v7, 16 }
  0x14   : > { %732 = vmatpush3.bf16.msra.mxu1 %v781_v5  ;;  %735 = vmatprep.mubr.msk.bf16.mxu1 %vm811_vm0, %v810_v1  ;;  %v351_v26 = vrot.slane %v778_v6, 1  ;;  %v352_v27 = vrot.slane %v779_v7, 1  ;;  %v491_v31 = vrot.slane %v778_v6, 2  ;;  %v492_v32 = vrot.slane %v779_v7, 2 }
  0x15   : > { %v226_v13 = vrot.slane %v224_v9, 1  ;;  %v231_v14 = vrot.slane %v229_v10, 1  ;;  %v418_v15 = vrot.slane %v222_v8, 1  ;;  %v424_v16 = vrot.slane %v229_v10, 2  ;;  %733 = vmatprep.subr.bf16.mxu1 %v810_v1 }
  0x16   : > { %v419_v17 = vrot.slane %v224_v9, 2  ;;  %v423_v18 = vrot.slane %v421_v12, 1  ;;  %v353_v28 = vsel %vm350_vm4, %v351_v26, %v352_v27  ;;  %v493_v33 = vsel %vm490_vm5, %v491_v31, %v492_v32 }
  0x17   : > { %v227_v19 = vor.u32 %v226_v13, %v222_v8 }
  0x18   : > { %734 = vmatpush3.bf16.msra.mxu1 %v783_v11  ;;  %v420_v21 = vor.u32 %v419_v17, %v418_v15  ;;  %v425_v22 = vor.u32 %v424_v16, %v423_v18 }
  0x19   : > { %v232_v23 = vsel %vm220_vm2, %v227_v19, %v231_v14 }
  0x1a   : > { %712 = vmatmul.mubr.msk.bf16.vlgmr.msra.gmra.mrb[0].mxu0 %vm245_vm1, %v232_v23  ;;  %v426_v24 = vsel %vm417_vm3, %v420_v21, %v425_v22 }
  0x1b   : > { %724 = vmatpush3.bf16.msra.mxu0 %v780_v20  ;;  %727 = vmatprep.mubr.msk.bf16.mxu0 %vm811_vm0, %v810_v1 }
  0x1c   : > { %725 = vmatprep.subr.bf16.mxu0 %v810_v1  ;;  %736 = vmatmul.mubr.msk.bf16.vlgmr.msra.gmra.mrb[4].mxu1 %vm245_vm1, %v426_v24 }
  0x1f   : > { %726 = vmatpush3.bf16.msra.mxu0 %v782_v25 }
  0x20   : > { %739 = vmatprep.subr.bf16.mxu0 %v810_v1 }
  0x22   : > { %728 = vmatmul.mubr.msk.bf16.vlgmr.msra.gmra.mrb[4].mxu0 %vm245_vm1, %v353_v28 }
  0x23   : > { %740 = vmatpush3.bf16.msra.mxu0 %v784_v29  ;;  %743 = vmatprep.mubr.msk.bf16.mxu0 %vm811_vm0, %v810_v1 }
  0x24   : > { %741 = vmatprep.subr.bf16.mxu0 %v810_v1 }
  0x27   : > { %742 = vmatpush3.bf16.msra.mxu0 %v785_v30 }
  0x2a   : > { %744 = vmatmul.mubr.msk.bf16.vlgmr.msra.gmra.mrb[8].mxu0 %vm245_vm1, %v493_v33 }
  0xe6   : > { %v338_v34 = vpop.f32.mrb[0].mxu1 }
  0xe7   : > { %v721_v35 = vpop.f32.mrb[1].mxu1 }
  0xe8   : > { %v341_v36 = vpop.f32.mrb[2].mxu1 }
  0xe9   : > { %v722_v37 = vpop.f32.mrb[3].mxu1 }
  0xed   : > { %v283_v38 = vpop.f32.mrb[0].mxu0 }
  0xee   : > { %v339_v39 = vadd.f32 %v338_v34, %v283_v38  ;;  %v713_v40 = vpop.f32.mrb[1].mxu0 }
  0xef   : > { %v286_v41 = vpop.f32.mrb[2].mxu0  ;;  %v476_v42 = vpop.f32.mrb[4].mxu1 }
  0xf0   : > { %v342_v43 = vadd.f32 %v341_v36, %v286_v41  ;;  %v714_v44 = vpop.f32.mrb[3].mxu0  ;;  %v737_v45 = vpop.f32.mrb[5].mxu1 }
  0xf1   : > { %v479_v46 = vpop.f32.mrb[6].mxu1 }
  0xf2   : > { %v738_v47 = vpop.f32.mrb[7].mxu1 }
  0xf5   : > { %v403_v48 = vpop.f32.mrb[4].mxu0 }
  0xf6   : > { %v410_v49 = vadd.f32 %v403_v48, %v339_v39  ;;  %v729_v50 = vpop.f32.mrb[5].mxu0 }
  0xf7   : > { %v406_v51 = vpop.f32.mrb[6].mxu0 }
  0xf8   : > { %v411_v52 = vadd.f32 %v406_v51, %v342_v43  ;;  %v483_v53 = vadd.f32 %v476_v42, %v410_v49  ;;  %v730_v54 = vpop.f32.mrb[7].mxu0 }
  0xfa   : > { %v484_v55 = vadd.f32 %v479_v46, %v411_v52 }
  0xfd   : > { %v543_v56 = vpop.f32.mrb[8].mxu0 }
  0xfe   : > { %v550_v58 = vadd.f32 %v543_v56, %v483_v53  ;;  %v745_v59 = vpop.f32.mrb[9].mxu0 }
  0xff   : > { %v546_v60 = vpop.f32.mrb[10].mxu0 }
 0x100   : > { %v559_v61 = vadd.f32 %v688_v57, %v550_v58  ;;  %v551_v62 = vadd.f32 %v546_v60, %v484_v55  ;;  %v746_v63 = vpop.f32.mrb[11].mxu0 }
 0x102   : > { %562 = vst.msk [vmem:[%s192_s22] sm:$0xff] %vm561_vm6, %v559_v61  ;;  %v560_v0 = vadd.f32 %v688_v57, %v551_v62 }
 0x104   : > { %563 = vst.msk [vmem:[%s192_s22 + $0x8] sm:$0xff] %vm561_vm6, %v560_v0 }
 0x105 PF: > { %s13_s14 = sadd.s32 1, %s808_s14   ;;  %s931_s12 = smov %s804_s13 }
 0x106   : > { %p10_p5 = scmp.ge.s32.totalorder %s13_s14, 4   ;;  %s932_s13 = smov %s934_s15 }
 0x108   :  { %12 = sbr.rel (!%p10_p5) target bundleno = 2 (0x2), region = 67 }

</bundles_post_ra>
